<compile_context>
chip_gen: v7x
topology: tpu7x:2x2x1
jax: 0.10.0
libtpu: 0.0.40
codegen_flags: <defaults>
</compile_context>

<pallas_src>
import jax
import jax.numpy as jnp
import numpy as np
from jax.experimental import pallas as pl
from jax.experimental.pallas import tpu as pltpu


# ----------------------------- Pallas kernel ---------------------------------
def band_merge_kernel(w_ref, b_ref, x_ref, o_ref):
    # w_ref: (n_bins, E*K)  merged, assignment-scaled projection weight
    # b_ref: (n_bins, 1)    merged, assignment-scaled bias
    # x_ref: (E*K, tt)      one batch element, one frame tile of the split feature
    # o_ref: (n_bins, tt)   corresponding output tile (lane-dense when tt % 128 == 0)
    y = jnp.dot(w_ref[...], x_ref[...], preferred_element_type=jnp.float32)
    o_ref[...] = (y + b_ref[...]).astype(o_ref.dtype)


# ----------------------------- wrapper ----------------------------------------
def _choose_frame_tile(n_frames, max_tile=512):
    """Largest lane-dense frame tile (<= max_tile) that divides n_frames."""
    if n_frames % 128 == 0:
        tt = min(n_frames, max_tile)
        while n_frames % tt != 0:
            tt //= 2
        return tt
    # Fall back to the full extent (legal block: equals the array dim). Stores are
    # masked for n_frames < 128, but that only happens at toy sizes.
    return n_frames


def band_merge(x, w_big, b_merged, n_bins, *, max_frame_tile=512):
    """x: (B, E, K, T) PyTorch layout (*, embed_dim, len(bins), n_frames).
    w_big: (n_bins, E*K); b_merged: (n_bins, 1). Returns (B, n_bins, T)."""
    B, E, K, T = x.shape
    EK = E * K
    assert w_big.shape == (n_bins, EK)
    assert b_merged.shape == (n_bins, 1)

    # E and K are adjacent axes -> this reshape is free (no HBM pass, no transpose).
    x_flat = x.reshape(B, EK, T)

    tt = _choose_frame_tile(T, max_frame_tile)
    grid = (B, T // tt)

    return pl.pallas_call(
        band_merge_kernel,
        out_shape=jax.ShapeDtypeStruct((B, n_bins, T), jnp.float32),
        grid=grid,
        in_specs=[
            pl.BlockSpec((n_bins, EK), lambda b, t: (0, 0)),               # merged weight
            pl.BlockSpec((n_bins, 1), lambda b, t: (0, 0)),                # merged bias
            pl.BlockSpec((pl.Squeezed(), EK, tt), lambda b, t: (b, 0, t)),  # x tile
        ],
        out_specs=pl.BlockSpec((pl.Squeezed(), n_bins, tt), lambda b, t: (b, 0, t)),
        compiler_params=pltpu.CompilerParams(
            dimension_semantics=("parallel", "parallel")),
    )(w_big, b_merged, x_flat)


# --------------------- trace-time parameter folding (glue) --------------------
def pack_merged_params(weights, biases, bins, assignment, n_bins, embed_dim):
    """Fold per-band weights/biases, zero-padding and frequency assignment into a
    single (n_bins, E*K) weight and (n_bins, 1) bias. Column order matches the
    (E, K) -> E*K flattening of x.reshape(B, E*K, T), i.e. column index = e*K + k."""
    K = len(bins)
    w_big = np.zeros((n_bins, embed_dim * K), dtype=np.float32)
    b_merged = np.zeros((n_bins, 1), dtype=np.float32)
    for k, (s, e) in enumerate(bins):
        w_pad = np.zeros((n_bins, embed_dim), dtype=np.float32)
        w_pad[s:e, :] = np.asarray(weights[k])
        b_pad = np.zeros((n_bins,), dtype=np.float32)
        b_pad[s:e] = np.asarray(biases[k])
        asg = np.asarray(assignment[k])[:, None]          # (n_bins, 1)
        w_big[:, k::K] = asg * w_pad                      # columns e*K + k, e = 0..E-1
        b_merged[:, 0] += asg[:, 0] * b_pad
    return jnp.asarray(w_big), jnp.asarray(b_merged)


def build_frequency_assignment(bins, n_bins):
    assignment = np.zeros((len(bins), n_bins), dtype=np.float32)
    for k, (s, e) in enumerate(bins):
        assignment[k, s:e] = 1.0
    bands_per_bin = assignment.sum(axis=0)
    assert np.all(bands_per_bin > 0), "Each bin should be assigned to at least one band."
    return assignment / bands_per_bin


# ----------------------------- reference (pure JAX, mirrors PyTorch loop) -----
def ref_forward(x, weights, biases, bins, assignment, n_bins):
    outs = []
    for k, (s, e) in enumerate(bins):
        xb = x[:, :, k, :]                                              # (B, E, T)
        yb = jnp.einsum("fe,bet->bft", weights[k], xb) + biases[k][None, :, None]
        yb = jnp.pad(yb, ((0, 0), (s, n_bins - e), (0, 0)))             # F.pad
        outs.append(yb)
    stacked = jnp.stack(outs, axis=-3)                                  # (B, K, n_bins, T)
    stacked = assignment[None, :, :, None] * stacked
    return stacked.sum(axis=-3)


# ----------------------------- main -------------------------------------------
if __name__ == "__main__":
    B, E, T = 2, 32, 128                      # T multiple of 128 -> lane-dense output tile
    bins = [(0, 6), (4, 10), (8, 16)]
    K = len(bins)
    n_bins = bins[-1][1]

    key = jax.random.PRNGKey(0)
    kx, *kparams = jax.random.split(key, 1 + 2 * K)

    # deterministic synthetic parameters (backbone[k] = pointwise projection E -> width_k)
    weights, biases = [], []
    for k, (s, e) in enumerate(bins):
        width = e - s
        weights.append(0.1 * jax.random.normal(kparams[2 * k], (width, E), jnp.float32))
        biases.append(0.1 * jax.random.normal(kparams[2 * k + 1], (width,), jnp.float32))

    assignment = build_frequency_assignment(bins, n_bins)               # (K, n_bins) numpy
    w_big, b_merged = pack_merged_params(weights, biases, bins, assignment, n_bins, E)

    # input in PyTorch layout (*, embed_dim, len(bins), n_frames)
    x = jax.random.normal(kx, (B, E, K, T), jnp.float32)

    out = band_merge(x, w_big, b_merged, n_bins)
    out = jax.block_until_ready(out)

    ref = ref_forward(x, weights, biases, bins, jnp.asarray(assignment), n_bins)
    assert out.shape == (B, n_bins, T)
    np.testing.assert_allclose(np.asarray(out), np.asarray(ref), rtol=1e-5, atol=1e-5)

    print("KERNEL_OK")
</pallas_src>

<mosaic_0001>
module attributes {stable_mosaic.version = 11 : i64} {
  func.func @band_merge_kernel(%arg0: i32, %arg1: i32, %arg2: memref<16x96xf32, #tpu.memory_space<vmem>>, %arg3: memref<16x1xf32, #tpu.memory_space<vmem>>, %arg4: memref<1x96x128xf32, #tpu.memory_space<vmem>>, %arg5: memref<1x16x128xf32, #tpu.memory_space<vmem>>) attributes {dimension_semantics = [#tpu.dimension_semantics<parallel>, #tpu.dimension_semantics<parallel>], iteration_bounds = array<i64: 2, 1>, scalar_prefetch = 0 : i64, scratch_operands = 0 : i64, tpu.core_type = #tpu.core_type<tc>, window_params = [{pipeline_mode = #tpu.pipeline_mode<synchronous>, transform_indices = @transform_0, window_bounds = array<i64: 16, 96>}, {pipeline_mode = #tpu.pipeline_mode<synchronous>, transform_indices = @transform_1, window_bounds = array<i64: 16, 1>}, {transform_indices = @transform_2, window_bounds = array<i64: 1, 96, 128>}, {transform_indices = @transform_3, window_bounds = array<i64: 1, 16, 128>}]} {
    %c0 = arith.constant 0 : index
    %c0_0 = arith.constant 0 : index
    %0 = vector.load %arg2[%c0, %c0_0] : memref<16x96xf32, #tpu.memory_space<vmem>>, vector<16x96xf32>
    %c0_1 = arith.constant 0 : index
    %c0_2 = arith.constant 0 : index
    %c0_3 = arith.constant 0 : index
    %1 = vector.load %arg4[%c0_1, %c0_2, %c0_3] : memref<1x96x128xf32, #tpu.memory_space<vmem>>, vector<1x96x128xf32>
    %2 = vector.shape_cast %1 : vector<1x96x128xf32> to vector<96x128xf32>
    %cst = arith.constant dense<0.000000e+00> : vector<16x128xf32>
    %3 = tpu.matmul %0, %2, %cst {dimension_numbers = #tpu.dot_dimension_numbers<[1], [0], [0], [1], [0, 0, 1, 1], [], []>} : vector<16x96xf32>, vector<96x128xf32>, vector<16x128xf32> -> vector<16x128xf32>
    %c0_4 = arith.constant 0 : index
    %c0_5 = arith.constant 0 : index
    %4 = vector.load %arg3[%c0_4, %c0_5] : memref<16x1xf32, #tpu.memory_space<vmem>>, vector<16x1xf32>
    %5 = vector.broadcast %4 : vector<16x1xf32> to vector<16x128xf32>
    %6 = arith.addf %3, %5 : vector<16x128xf32>
    %c0_6 = arith.constant 0 : index
    %c0_7 = arith.constant 0 : index
    %c0_8 = arith.constant 0 : index
    %7 = vector.load %arg5[%c0_6, %c0_7, %c0_8] : memref<1x16x128xf32, #tpu.memory_space<vmem>>, vector<1x16x128xf32>
    %8 = vector.shape_cast %7 : vector<1x16x128xf32> to vector<16x128xf32>
    %9 = vector.shape_cast %6 : vector<16x128xf32> to vector<1x16x128xf32>
    tpu.vector_store %arg5[%c0_6, %c0_7, %c0_8], %9 {strides = array<i32>} : memref<1x16x128xf32, #tpu.memory_space<vmem>>, vector<1x16x128xf32>,
    return
  }
  func.func @transform_0(%arg0: i32, %arg1: i32) -> (i32, i32) {
    %c0_i32 = arith.constant 0 : i32
    %c0_i32_0 = arith.constant 0 : i32
    %c0_i32_1 = arith.constant 0 : i32
    return %c0_i32, %c0_i32_0 : i32, i32
  }
  func.func @transform_1(%arg0: i32, %arg1: i32) -> (i32, i32) {
    %c0_i32 = arith.constant 0 : i32
    %c0_i32_0 = arith.constant 0 : i32
    %c0_i32_1 = arith.constant 0 : i32
    return %c0_i32, %c0_i32_0 : i32, i32
  }
  func.func @transform_2(%arg0: i32, %arg1: i32) -> (i32, i32, i32) {
    %c0_i32 = arith.constant 0 : i32
    %c0_i32_0 = arith.constant 0 : i32
    return %arg0, %c0_i32, %arg1 : i32, i32, i32
  }
  func.func @transform_3(%arg0: i32, %arg1: i32) -> (i32, i32, i32) {
    %c0_i32 = arith.constant 0 : i32
    %c0_i32_0 = arith.constant 0 : i32
    return %arg0, %c0_i32, %arg1 : i32, i32, i32
  }
}

</mosaic_0001>

<bundles_post_ra>
// kernel: tpu_custom_call.1
= control target key start
LH: loop header
LB: loop body
LE: loop exit
PB: predicated region body
PF: predicated region fallthrough
CT: control target
= control target key end

     0   :  { %8 = vsyncpa [#allocation3], 0  ;;  %s912_s0 = inlined_call_operand.vmem [shape: f32[16,96], index: 0, kind: input, shape index: {}]   ;;  %s913_s1 = inlined_call_operand.vmem [shape: f32[16,1], index: 1, kind: input, shape index: {}]   ;;  %s914_s2 = inlined_call_operand.hbm [shape: f32[2,96,128], index: 2, kind: input, shape index: {}]   ;;  %s915_s3 = inlined_call_operand.hbm [shape: f32[2,16,128], index: 3, kind: output, shape index: {}]  }
   0x1   :  { %10 = vsyncpa [#allocation3 + $0x1], 0 }
   0x2   :  { %11 = vsyncpa [#allocation4], 0 }
   0x3   :  { %13 = vsyncpa [#allocation4 + $0x1], 0  ;;  %s708_s12 = smov 0   ;;  %s710_s13 = smov 0  }
   0x4   :  { %s712_s14 = smov 0   ;;  %s714_s15 = smov 0  }
   0x5   :  { %s716_s16 = smov 0   ;;  %s718_s17 = smov 0  }
   0x6 LB: > { %s416_s18 = sadd.s32 4294967295, %s679_s17   ;;  %s417_s19 = sadd.s32 4294967294, %s679_s17   ;;  %s679_s17 = sphi %s718_s17, %s19_s17   ;;  %s675_s16 = sphi %s716_s16, %s930_s16   ;;  %s671_s15 = sphi %s714_s15, %s929_s15   ;;  %s667_s14 = sphi %s712_s14, %s928_s14   ;;  %s663_s13 = sphi %s710_s13, %s927_s13   ;;  %s659_s12 = sphi %s708_s12, %s926_s12  }
   0x7   : > { %s31_s20 = sadd.s32 1, %s675_s16  ;;  %s82_s21 = sadd.s32 1, %s667_s14 }
   0x8   : > { %p33_p0 = scmp.ge.s32.totalorder %s31_s20, 2  ;;  %p89_p1 = scmp.ne.s32.totalorder %s667_s14, %s663_s13 }
   0x9   : > { %p90_p2 = scmp.eq.s32.totalorder %s679_s17, 0  ;;  %p95_p3 = scmp.ne.s32.totalorder %s663_s13, %s659_s12 }
   0xa   : > { %s932_s20 = smov (%p33_p0, %s31_s20), 0  ;;  %p96_p5 = scmp.eq.s32.totalorder %s416_s18, 0 }
   0xb   : > { %p749_p4 = por %p90_p2, %p89_p1  ;;  %s77_s23 = ssub.s32 %s675_s16, %s932_s20 }
   0xc   : > { %p121_p6 = scmp.eq.s32.totalorder %s416_s18, 1  ;;  %p80_p7 = scmp.eq.s32.totalorder %s77_s23, 0 }
   0xd   : > { %p755_p8 = por %p96_p5, %p95_p3  ;;  %p127_p10 = scmp.eq.s32.totalorder %s417_s19, 1 }
   0xe   : > { %p759_p9 = por %p121_p6, %p89_p1  ;;  %p511_p13 = scmp.lt.s32.totalorder %s679_s17, 2 }
   0xf   : > { %s764_s26 = scalar_select %p80_p7, %s667_s14, %s82_s21  }
  0x10   : > { %s919_s25 = scalar_select %p759_p9, 1, 0 }
  0x11   : > { %p766_p11 = por %p127_p10, %p95_p3  ;;  %s153_s28 = sand.u32 1, %s667_s14  }
  0x12   : > { %s496_s29 = smul.u32 96, %s153_s28  ;;  %p776_p0 = pnand %p511_p13, %p749_p4 }
  0x13   : > { %s920_s27 = scalar_select %p766_p11, 1, 0 }
  0x14   : > { %s497_s30 = smul.u32 1536, %s675_s16  ;;  %s157_s8 = scalar_lea.vmem [#allocation2], %s496_s29 }
  0x15   : > { %s165_s9 = sshll.u32 %s157_s8, 4  ;;  %s788_s10 = scalar_lea.sflag [#allocation3], %s153_s28  ;;  %s785_s9 = int_to_ptr.vmem [resolvable:$true] %s165_s9 }
  0x16   : > { %s783_s7 = scalar_lea.hbm %s914_s2, %s497_s30  ;;  %p569_p3 = pneg %p776_p0 }
  0x17   : > { %s567_s11 = scalar_lea.hbm %s783_s7, 1536  ;;  %s572_s21 = scalar_lea.hbm %s914_s2, 3072 }
  0x18   : > { %p568_p2 = scmp.ne.s32.totalorder %s783_s7, %s567_s11  ;;  %p573_p6 = scmp.lt.u32.totalorder %s783_s7, %s914_s2 }
  0x19   : > { %p574_p7 = scmp.lt.u32.totalorder %s572_s21, %s567_s11  ;;  %p576_p13 = scmp.lt.u32.totalorder %s567_s11, %s783_s7 }
  0x1a   : > { %p570_p4 = pnand %p569_p3, %p568_p2 }
  0x1b   : > { %p575_p10 = por %p574_p7, %p573_p6 }
  0x1c   : > { %p571_p5 = pneg %p570_p4 }
  0x1d   : > { %p577_p12 = por %p576_p13, %p575_p10 }
  0x1f   : > { %p578_p1 = pnand %p577_p12, %p571_p5 }
  0x21   : > { %581 = shalt.err (!%p578_p1)
}
  0x22   : > { %s582_s28 = scalar_lea.vmem %s785_s9, 1536  ;;  %s681_s29 = smov [#allocation2]  }
  0x23   : > { %p583_p2 = scmp.ne.s32.totalorder %s785_s9, %s582_s28  ;;  %s587_s30 = sshll.u32 %s681_s29, 4  ;;  %s588_s30 = int_to_ptr.vmem [resolvable:$false] %s587_s30 }
  0x24   : > { %s589_s5 = scalar_lea.vmem %s588_s30, 3072  ;;  %p590_p9 = scmp.lt.s32.totalorder %s785_s9, %s588_s30 }
  0x25   : > { %p585_p4 = pnand %p583_p2, %p569_p3  ;;  %p591_p6 = scmp.lt.s32.totalorder %s589_s5, %s582_s28 }
  0x27   : > { %p586_p11 = pneg %p585_p4  ;;  %p592_p7 = por %p591_p6, %p590_p9 }
  0x29   : > { %p593_p10 = pnand %p592_p7, %p586_p11 }
  0x2b   : > { %596 = shalt.err (!%p593_p10)
}
  0x2c   : > { %s682_s6 = smov 128   ;;  %s683_s8 = smov 8  }
  0x2d   : > { %506 = dma.hbm_to_vmem [thread:$0]  (!%p776_p0), %s783_s7, 1536, %s785_s9, %s788_s10, %s682_s6, %s682_s6, %s683_s8  }
  0x2e   : > { %p173_p12 = scmp.lt.s32.totalorder %s679_s17, 3  ;;  %p922_p1 = scmp.ge.s32.totalorder %s679_s17, 1 }
  0x30   : > { %p174_p3 = pnand %p922_p1, %p173_p12 }
  0x31   : > { %s820_s11 = sand.u32 (!%p174_p3), 1, %s663_s13  }
  0x32   : > { %177 = sbr.rel (%p174_p3) target bundleno = 315 (0x13b), region = 32  ;;  %s180_s19 = scalar_lea.sflag (!%p174_p3), [#allocation3], %s820_s11 }
  0x33   : > { %s498_s18 = smul.u32 (!%p174_p3), 96, %s820_s11 }
  0x35   : > { %s824_s21 = scalar_lea.vmem (!%p174_p3), [#allocation2], %s498_s18 }
  0x39   : > { %650 = dma.done.wait (%p755_p8), %s180_s19, 1536  }
  0x3a   : > { %652 = vsyncadd (%p755_p8), %s180_s19, 4294965760  ;;  %v684_v0 = vmov 0   ;;  %v208_v1 = vld [vmem:[%s824_s21] sm:$0xff]  ;;  %v209_v2 = vld [vmem:[%s824_s21 + $0x8] sm:$0xff]  ;;  %vm232_vm0 = vcmask 785408   ;;  %s422_s29 = sshll.u32 %s820_s11, 4 }
  0x3b   : > { %566 = vset.pattern.permute.xlu0 %v684_v0  ;;  %v210_v3 = vld [vmem:[%s824_s21 + $0x10] sm:$0xff]  ;;  %v472_v4 = vpack.c.bf16 %v209_v2, %v208_v1  ;;  %v211_v5 = vld [vmem:[%s824_s21 + $0x18] sm:$0xff]  ;;  %v212_v7 = vld [vmem:[%s824_s21 + $0x20] sm:$0xff]  ;;  %s205_s30 = scalar_lea.vmem [#allocation5], %s422_s29  ;;  %s430_s6 = sshll.u32 %s671_s15, 8 }
  0x3c   : > { %v476_v6 = vpack.c.bf16 %v211_v5, %v210_v3  ;;  %v213_v8 = vld [vmem:[%s824_s21 + $0x28] sm:$0xff]  ;;  %v206_v9 = vld [vmem:[%s912_s0] sm:$0xff]  ;;  %v214_v12 = vld [vmem:[%s824_s21 + $0x30] sm:$0xff]  ;;  %s331_s5 = sshll.u32 %s205_s30, 4  ;;  %s863_s19 = scalar_lea.hbm %s915_s3, %s430_s6  ;;  %s858_s5 = int_to_ptr.vmem [resolvable:$true] %s331_s5 }
  0x3d   : > { %473 = vmatprep.subr.bf16.mxu0 %v472_v4  ;;  %v220_v10 = vld [vmem:[%s913_s1] sm:$0xff]  ;;  %v480_v11 = vpack.c.bf16 %v213_v8, %v212_v7  ;;  %469 = vmatprep.mubr.msk.f32.mxu0 %vm232_vm0, %v206_v9  ;;  %v215_v13 = vld [vmem:[%s824_s21 + $0x38] sm:$0xff]  ;;  %v221_v14 = vld [vmem:[%s913_s1 + $0x8] sm:$0xff]  ;;  %s597_s24 = scalar_lea.vmem %s858_s5, 256  ;;  %p923_p9 = scmp.ne.s32.totalorder %s919_s25, 0 }
  0x3e   : > { %475 = vmatpush3.bf16.msra.mxu0 %v472_v4  ;;  %224 = vperm.xlu0 %566, %v220_v10   ;;  %v484_v15 = vpack.c.bf16 %v215_v13, %v214_v12  ;;  %v216_v16 = vld [vmem:[%s824_s21 + $0x40] sm:$0xff]  ;;  %v217_v17 = vld [vmem:[%s824_s21 + $0x48] sm:$0xff]  ;;  %v218_v19 = vld [vmem:[%s824_s21 + $0x50] sm:$0xff]  ;;  %p598_p8 = scmp.ne.s32.totalorder %s858_s5, %s597_s24  ;;  %s685_s15 = smov [#allocation5]  }
  0x3f   : > { %477 = vmatprep.subr.bf16.mxu0 %v476_v6  ;;  %v488_v18 = vpack.c.bf16 %v217_v17, %v216_v16  ;;  %v219_v20 = vld [vmem:[%s824_s21 + $0x58] sm:$0xff]  ;;  %v207_v22 = vld [vmem:[%s912_s0 + $0x8] sm:$0xff]  ;;  %s317_s21 = scalar_lea.sflag [#allocation4], %s820_s11  ;;  %s601_s4 = sshll.u32 %s685_s15, 4  ;;  %s602_s4 = int_to_ptr.vmem [resolvable:$false] %s601_s4 }
  0x40   : > { %v492_v21 = vpack.c.bf16 %v219_v20, %v218_v19  ;;  %p599_p11 = pnand %p598_p8, %p923_p9  ;;  %s603_s7 = scalar_lea.vmem %s602_s4, 512 }
  0x41   : > { %p604_p5 = scmp.lt.s32.totalorder %s858_s5, %s602_s4  ;;  %p605_p13 = scmp.lt.s32.totalorder %s603_s7, %s597_s24 }
  0x42   : > { %479 = vmatpush3.bf16.msra.mxu0 %v476_v6  ;;  %229 = vperm.xlu0 %566, %v221_v14   ;;  %p600_p0 = pneg %p599_p11 }
  0x43   : > { %481 = vmatprep.subr.bf16.mxu0 %v480_v11  ;;  %p606_p2 = por %p605_p13, %p604_p5 }
  0x45   : > { %p607_p4 = pnand %p606_p2, %p600_p0 }
  0x46   : > { %483 = vmatpush3.bf16.msra.mxu0 %v480_v11 }
  0x47   : > { %485 = vmatprep.subr.bf16.mxu0 %v484_v15 }
  0x4a   : > { %487 = vmatpush3.bf16.msra.mxu0 %v484_v15 }
  0x4b   : > { %489 = vmatprep.subr.bf16.mxu0 %v488_v18 }
  0x4e   : > { %491 = vmatpush3.bf16.msra.mxu0 %v488_v18 }
  0x4f   : > { %493 = vmatprep.subr.bf16.mxu0 %v492_v21 }
  0x52   : > { %495 = vmatpush3.bf16.msra.mxu0 %v492_v21 }
  0x55   : > { %470 = vmatmul.mubr.msk.f32.vlgmr.msra.gmra.mrb[0].mxu0 %vm232_vm0, %v207_v22 }
  0xbd   : > { %v225_v23 = vpop.permute.xlu0 %224 }
  0xc1   : > { %v230_v24 = vpop.permute.xlu0 %229 }
 0x128   : > { %v471_v25 = vpop.f32.mrb[0].mxu0 }
 0x129   : > { %v311_v26 = vadd.f32 %v471_v25, %v230_v24  ;;  %v305_v27 = vpop.f32.mrb[1].mxu0 }
 0x12a   : > { %v306_v28 = vadd.f32 %v305_v27, %v225_v23 }
 0x12b   : > { %315 = vst [vmem:[%s205_s30 + $0x8] sm:$0xff] %v311_v26 }
 0x12c   : > { %314 = vst [vmem:[%s205_s30] sm:$0xff] %v306_v28 }
 0x12d   : > { %610 = shalt.err (!%p607_p4)
}
 0x12e   : > { %s611_s9 = scalar_lea.hbm %s863_s19, 256  ;;  %s615_s23 = scalar_lea.hbm %s915_s3, 512 }
 0x12f   : > { %p612_p6 = scmp.ne.s32.totalorder %s863_s19, %s611_s9  ;;  %p616_p12 = scmp.lt.u32.totalorder %s863_s19, %s915_s3 }
 0x130   : > { %p617_p1 = scmp.lt.u32.totalorder %s615_s23, %s611_s9  ;;  %p619_p8 = scmp.lt.u32.totalorder %s611_s9, %s863_s19 }
 0x131   : > { %p613_p7 = pnand %p612_p6, %p923_p9 }
 0x132   : > { %p618_p3 = por %p617_p1, %p616_p12 }
 0x133   : > { %p614_p10 = pneg %p613_p7 }
 0x134   : > { %p620_p11 = por %p619_p8, %p618_p3 }
 0x136   : > { %p621_p0 = pnand %p620_p11, %p614_p10 }
 0x138   : > { %624 = shalt.err (!%p621_p0)
}
 0x139   : > { %s686_s30 = smov 128   ;;  %s687_s6 = smov 8  }
 0x13a   : > { %501 = dma.vmem_to_hbm [thread:$0]  (%p923_p9), %s858_s5, 256, %s863_s19, %s317_s21, %s686_s30, %s686_s30, %s687_s6  }
 0x13b PF: > { %s346_s8 = sand.u32 1, %s659_s12   ;;  %p924_p5 = scmp.ne.s32.totalorder %s920_s27, 0 }
 0x13c   : > { %p925_p13 = scmp.ge.s32.totalorder %s679_s17, 2  ;;  %s347_s18 = scalar_lea.sflag [#allocation4], %s346_s8 }
 0x13e   : > { %p508_p2 = pnand %p925_p13, %p924_p5 }
 0x140   : > { %654 = dma.done.wait (!%p508_p2), %s347_s18, 256  }
 0x141   : > { %656 = vsyncadd (!%p508_p2), %s347_s18, 4294967040  ;;  %s19_s17 = sadd.s32 1, %s679_s17   ;;  %s926_s12 = smov %s663_s13 }
 0x142   : > { %p16_p4 = scmp.ge.s32.totalorder %s19_s17, 4   ;;  %s927_s13 = smov %s667_s14 }
 0x143   : > { %s928_s14 = smov %s764_s26  ;;  %s929_s15 = smov %s675_s16 }
 0x144   : > { %s930_s16 = smov %s932_s20  ;;  %18 = sbr.rel (!%p16_p4) target bundleno = 6 (0x6), region = 77 }
 0x14b   :  { %352 = vsyncpa [#allocation3], 1 }
 0x14c   :  { %354 = vsyncpa [#allocation3 + $0x1], 1 }
 0x14d   :  { %355 = vsyncpa [#allocation4], 1 }
 0x14e   :  { %357 = vsyncpa [#allocation4 + $0x1], 1 }

</bundles_post_ra>
